<compile_context>
chip_gen: v7x
topology: tpu7x:2x2x1
jax: 0.10.0
libtpu: 0.0.40
codegen_flags: <defaults>
</compile_context>

<pallas_src>
import jax
import jax.numpy as jnp
from jax.experimental import pallas as pl
from jax.experimental.pallas import tpu as pltpu


def _round_up(x, m):
    return ((x + m - 1) // m) * m


def _choose_token_block(n):
    """Tokens per grid step: large blocks amortize per-step overhead."""
    if n >= 256:
        return 256
    return _round_up(max(n, 8), 8)


def _dropout_mask(key, shape, p, dtype):
    """Pre-scaled inverted-dropout mask: keep / (1 - p), zeros where dropped."""
    keep = jax.random.bernoulli(key, 1.0 - p, shape)
    return keep.astype(dtype) * (1.0 / (1.0 - p))


def _embed_eval_kernel(ids_ref, w_ref, out_ref):
    tb = ids_ref.shape[0]
    ntoken = w_ref.shape[0]
    ids = ids_ref[...]                                        # (TB, 1) int32
    iota = jax.lax.broadcasted_iota(jnp.int32, (tb, ntoken), 1)
    one_hot = (ids == iota).astype(w_ref.dtype)               # (TB, ntoken)
    emb = jnp.dot(one_hot, w_ref[...],
                  preferred_element_type=jnp.float32)         # (TB, ninp) MXU
    out_ref[...] = emb.astype(out_ref.dtype)


def _embed_dropout_kernel(ids_ref, w_ref, mask_ref, out_ref):
    tb = ids_ref.shape[0]
    ntoken = w_ref.shape[0]
    ids = ids_ref[...]                                        # (TB, 1) int32
    iota = jax.lax.broadcasted_iota(jnp.int32, (tb, ntoken), 1)
    one_hot = (ids == iota).astype(w_ref.dtype)               # (TB, ntoken)
    emb = jnp.dot(one_hot, w_ref[...],
                  preferred_element_type=jnp.float32)         # (TB, ninp) MXU
    # Inverted dropout: mask is pre-scaled by 1/(1-p), zeros where dropped.
    out_ref[...] = (emb * mask_ref[...]).astype(out_ref.dtype)


def embedding_table_forward(ids, weight, *, dropout=0.5, training=False,
                            rng_key=None):
    """Forward pass of EmbeddingTable: dropout(embedding_lookup(ids))."""
    seq, batch = ids.shape
    ntoken, ninp = weight.shape
    n = seq * batch

    tb = _choose_token_block(n)
    n_pad = _round_up(n, tb)
    grid = (n_pad // tb,)

    ids_col = ids.reshape(n, 1).astype(jnp.int32)
    if n_pad != n:
        ids_col = jnp.pad(ids_col, ((0, n_pad - n), (0, 0)))

    ids_spec = pl.BlockSpec((tb, 1), lambda i: (i, 0))
    # Constant block index -> table stays resident in VMEM across all steps.
    w_spec = pl.BlockSpec((ntoken, ninp), lambda i: (0, 0))
    out_spec = pl.BlockSpec((tb, ninp), lambda i: (i, 0))

    use_dropout = bool(training) and float(dropout) > 0.0
    if use_dropout:
        if rng_key is None:
            rng_key = jax.random.PRNGKey(0)
        mask = _dropout_mask(rng_key, (n_pad, ninp), float(dropout),
                             weight.dtype)
        kernel = _embed_dropout_kernel
        operands = (ids_col, weight, mask)
        in_specs = [ids_spec, w_spec,
                    pl.BlockSpec((tb, ninp), lambda i: (i, 0))]
    else:
        kernel = _embed_eval_kernel
        operands = (ids_col, weight)
        in_specs = [ids_spec, w_spec]

    out = pl.pallas_call(
        kernel,
        out_shape=jax.ShapeDtypeStruct((n_pad, ninp), weight.dtype),
        grid=grid,
        in_specs=in_specs,
        out_specs=out_spec,
        compiler_params=pltpu.CompilerParams(
            dimension_semantics=("parallel",)),
    )(*operands)

    return out[:n].reshape(seq, batch, ninp)


if __name__ == "__main__":
    # Small shapes consistent with the module: EmbeddingTable(ntoken, ninp, p)
    ntoken, ninp, dropout = 64, 32, 0.5
    seq, batch = 8, 2

    key = jax.random.PRNGKey(0)
    kw, ki, kd = jax.random.split(key, 3)
    # nn.init.uniform_(encoder.weight, -0.1, 0.1)
    weight = jax.random.uniform(kw, (ntoken, ninp), jnp.float32,
                                minval=-0.1, maxval=0.1)
    ids = jax.random.randint(ki, (seq, batch), 0, ntoken, dtype=jnp.int32)

    # Pure-JAX reference for the embedding lookup.
    ref = jnp.take(weight, ids.reshape(-1), axis=0).reshape(seq, batch, ninp)

    # Eval-mode forward (dropout is identity).
    out_eval = jax.block_until_ready(
        embedding_table_forward(ids, weight, dropout=dropout, training=False))
    assert out_eval.shape == (seq, batch, ninp)
    assert out_eval.dtype == jnp.float32
    assert jnp.allclose(out_eval, ref, atol=1e-6), "embedding gather mismatch"

    # Training-mode forward (blocked dropout mask applied in-kernel).
    out_train = jax.block_until_ready(
        embedding_table_forward(ids, weight, dropout=dropout, training=True,
                                rng_key=kd))
    assert out_train.shape == (seq, batch, ninp)

    # Recompute the exact same pre-scaled mask the wrapper used and compare.
    n = seq * batch
    tb = _choose_token_block(n)
    n_pad = _round_up(n, tb)
    mask_full = _dropout_mask(kd, (n_pad, ninp), float(dropout), jnp.float32)
    mask = mask_full[:n].reshape(seq, batch, ninp)
    assert jnp.allclose(out_train, ref * mask, atol=1e-6), "dropout mismatch"

    print("KERNEL_OK")
</pallas_src>

<mosaic_0001>
module attributes {stable_mosaic.version = 11 : i64} {
  func.func @_embed_eval_kernel(%arg0: i32, %arg1: memref<16x1xi32, #tpu.memory_space<vmem>>, %arg2: memref<64x32xf32, #tpu.memory_space<vmem>>, %arg3: memref<16x32xf32, #tpu.memory_space<vmem>>) attributes {dimension_semantics = [#tpu.dimension_semantics<parallel>], iteration_bounds = array<i64: 1>, scalar_prefetch = 0 : i64, scratch_operands = 0 : i64, tpu.core_type = #tpu.core_type<tc>, window_params = [{transform_indices = @transform_0, window_bounds = array<i64: 16, 1>}, {pipeline_mode = #tpu.pipeline_mode<synchronous>, transform_indices = @transform_1, window_bounds = array<i64: 64, 32>}, {transform_indices = @transform_2, window_bounds = array<i64: 16, 32>}]} {
    %c0 = arith.constant 0 : index
    %c0_0 = arith.constant 0 : index
    %0 = vector.load %arg1[%c0, %c0_0] : memref<16x1xi32, #tpu.memory_space<vmem>>, vector<16x1xi32>
    %1 = tpu.iota {dimensions = array<i32: 1>} : vector<16x64xi32>
    %2 = vector.broadcast %0 : vector<16x1xi32> to vector<16x64xi32>
    %3 = arith.cmpi eq, %2, %1 : vector<16x64xi32>
    %4 = arith.extui %3 : vector<16x64xi1> to vector<16x64xi32>
    %5 = arith.sitofp %4 : vector<16x64xi32> to vector<16x64xf32>
    %c0_1 = arith.constant 0 : index
    %c0_2 = arith.constant 0 : index
    %6 = vector.load %arg2[%c0_1, %c0_2] : memref<64x32xf32, #tpu.memory_space<vmem>>, vector<64x32xf32>
    %cst = arith.constant dense<0.000000e+00> : vector<16x32xf32>
    %7 = tpu.matmul %5, %6, %cst {dimension_numbers = #tpu.dot_dimension_numbers<[1], [0], [0], [1], [0, 0, 1, 1], [], []>} : vector<16x64xf32>, vector<64x32xf32>, vector<16x32xf32> -> vector<16x32xf32>
    %c0_3 = arith.constant 0 : index
    %c0_4 = arith.constant 0 : index
    %8 = vector.load %arg3[%c0_3, %c0_4] : memref<16x32xf32, #tpu.memory_space<vmem>>, vector<16x32xf32>
    tpu.vector_store %arg3[%c0_3, %c0_4], %7 {strides = array<i32>} : memref<16x32xf32, #tpu.memory_space<vmem>>, vector<16x32xf32>,
    return
  }
  func.func @transform_0(%arg0: i32) -> (i32, i32) {
    %c0_i32 = arith.constant 0 : i32
    %c0_i32_0 = arith.constant 0 : i32
    return %arg0, %c0_i32 : i32, i32
  }
  func.func @transform_1(%arg0: i32) -> (i32, i32) {
    %c0_i32 = arith.constant 0 : i32
    %c0_i32_0 = arith.constant 0 : i32
    %c0_i32_1 = arith.constant 0 : i32
    return %c0_i32, %c0_i32_0 : i32, i32
  }
  func.func @transform_2(%arg0: i32) -> (i32, i32) {
    %c0_i32 = arith.constant 0 : i32
    %c0_i32_0 = arith.constant 0 : i32
    return %arg0, %c0_i32 : i32, i32
  }
}

</mosaic_0001>

<bundles_post_ra>
// kernel: tpu_custom_call.1
= control target key start
LH: loop header
LB: loop body
LE: loop exit
PB: predicated region body
PF: predicated region fallthrough
CT: control target
= control target key end

     0   :  { %v216_v2 = vmov 0   ;;  %s278_s0 = inlined_call_operand.vmem [shape: s32[16,1], index: 0, kind: input, shape index: {}]   ;;  %s279_s1 = inlined_call_operand.vmem [shape: f32[64,32], index: 1, kind: input, shape index: {}]   ;;  %s280_s2 = inlined_call_operand.hbm [shape: f32[16,32], index: 2, kind: output, shape index: {}]  }
   0x1   :  { %v12_v0 = vld [vmem:[%s278_s0] sm:$0xff]  ;;  %191 = vset.pattern.permute.xlu0 %v216_v2  ;;  %v29_v3 = vld [vmem:[%s279_s1 + $0x8] sm:$0xff]  ;;  %v30_v4 = vld [vmem:[%s279_s1 + $0x10] sm:$0xff] }
   0x2   :  { %v28_v1 = vld [vmem:[%s279_s1] sm:$0xff]  ;;  %v31_v5 = vld [vmem:[%s279_s1 + $0x18] sm:$0xff]  ;;  %17 = vperm.xlu0 %191, %v12_v0   ;;  %v13_v6 = vld [vmem:[%s278_s0 + $0x8] sm:$0xff] }
   0x3   :  { %v170_v7 = vpack.c.bf16 %v29_v3, %v28_v1  ;;  %v174_v8 = vpack.c.bf16 %v31_v5, %v30_v4  ;;  %v32_v9 = vld [vmem:[%s279_s1 + $0x20] sm:$0xff]  ;;  %v33_v10 = vld [vmem:[%s279_s1 + $0x28] sm:$0xff] }
   0x4   :  { %7 = vsyncpa [#allocation3], 0  ;;  %v178_v11 = vpack.c.bf16 %v33_v10, %v32_v9  ;;  %v34_v12 = vld [vmem:[%s279_s1 + $0x30] sm:$0xff]  ;;  %v35_v13 = vld [vmem:[%s279_s1 + $0x38] sm:$0xff]  ;;  %v14_v15 = vlaneseq  ;;  %vm36_vm0 = vcmask 523264   ;;  %v217_v18 = vmov 0.0  }
   0x5   :  { %171 = vmatprep.subr.bf16.mxu0 %v170_v7  ;;  %v182_v14 = vpack.c.bf16 %v35_v13, %v34_v12  ;;  %s218_s28 = smov [#allocation2]   ;;  %vm118_vm3 = vcmask 261120  }
   0x6   :  { %173 = vmatpush3.bf16.msra.mxu0 %v170_v7  ;;  %20 = vperm.xlu0 %191, %v13_v6   ;;  %v15_v16 = vand.u32 127, %v14_v15  ;;  %s126_s1 = sshll.u32 %s218_s28, 4  ;;  %s127_s1 = int_to_ptr.vmem [resolvable:$true] %s126_s1 }
   0x7   :  { %175 = vmatprep.subr.bf16.mxu0 %v174_v8  ;;  %s192_s29 = scalar_lea.vmem %s127_s1, 256  ;;  %p197_p1 = scmp.lt.s32.totalorder %s127_s1, %s127_s1 }
   0x8   :  { %p193_p0 = scmp.ne.s32.totalorder %s127_s1, %s192_s29  ;;  %p198_p2 = scmp.lt.s32.totalorder %s192_s29, %s192_s29 }
   0xa   :  { %177 = vmatpush3.bf16.msra.mxu0 %v174_v8  ;;  %p199_p3 = por %p198_p2, %p197_p1 }
   0xb   :  { %179 = vmatprep.subr.bf16.mxu0 %v178_v11 }
   0xc   :  { %p200_p4 = pnand %p199_p3, %p193_p0 }
   0xe   :  { %181 = vmatpush3.bf16.msra.mxu0 %v178_v11 }
   0xf   :  { %183 = vmatprep.subr.bf16.mxu0 %v182_v14 }
  0x12   :  { %185 = vmatpush3.bf16.msra.mxu0 %v182_v14 }
  0x81   :  { %v18_v17 = vpop.permute.xlu0 %17 }
  0x82   :  { %vm22_vm1 = vcmp.eq.s32.totalorder %v18_v17, %v15_v16 }
  0x83   :  { %v137_v19 = vsel %vm22_vm1, 1.0, %v217_v18 }
  0x84   :  { %167 = vmatprep.mubr.msk.f32.mxu0 %vm36_vm0, %v137_v19 }
  0x85   :  { %v21_v20 = vpop.permute.xlu0 %20 }
  0x86   :  { %vm23_vm2 = vcmp.eq.s32.totalorder %v21_v20, %v15_v16 }
  0x87   :  { %v138_v21 = vsel %vm23_vm2, 1.0, %v217_v18 }
  0x88   :  { %168 = vmatmul.mubr.msk.f32.vlgmr.msra.gmra.mrb[0].mxu0 %vm36_vm0, %v138_v21 }
 0x15b   :  { %v169_v22 = vpop.f32.mrb[0].mxu0 }
 0x15c   :  { %120 = vst.msk [vmem:[#allocation2 + $0x8] sm:$0xff] %vm118_vm3, %v169_v22  ;;  %v109_v23 = vpop.f32.mrb[1].mxu0 }
 0x15d   :  { %119 = vst.msk [vmem:[#allocation2] sm:$0xff] %vm118_vm3, %v109_v23 }
 0x15e   :  { %203 = shalt.err (!%p200_p4)
}
 0x15f   :  { %s204_s4 = scalar_lea.hbm %s280_s2, 256 }
 0x160   :  { %p205_p5 = scmp.ne.s32.totalorder %s280_s2, %s204_s4  ;;  %p208_p6 = scmp.lt.u32.totalorder %s204_s4, %s280_s2 }
 0x162   :  { %p210_p7 = pnand %p208_p6, %p205_p5 }
 0x164   :  { %213 = shalt.err (!%p210_p7)
}
 0x165   :  { %s219_s9 = smov 128   ;;  %s220_s10 = smov 8  }
 0x166   :  { %132 = dma.vmem_to_hbm [thread:$0]  %s127_s1, 256, %s280_s2, [#allocation3], %s219_s9, %s219_s9, %s220_s10  }
 0x167   :  { %214 = dma.done.wait [#allocation3], 256  }
 0x168   :  { %215 = vsyncadd [#allocation3], 4294967040 }
 0x169   :  { %136 = vsyncpa [#allocation3], 1 }

</bundles_post_ra>
